<compile_context>
chip_gen: v6e
topology: v6e:2x2x1
jax: 0.10.0
libtpu: 0.0.40
codegen_flags: <defaults>
</compile_context>

<pallas_src>
import math
import functools

import jax
import jax.numpy as jnp
from jax import lax
from jax.experimental import pallas as pl
from jax.experimental.pallas import tpu as pltpu


# ----------------------------------------------------------------------------
# VMEM budget / tiling helpers
# ----------------------------------------------------------------------------
def _vmem_budget():
    """Returns (tile_budget_bytes, vmem_limit_bytes) derived from the chip."""
    try:
        cap = int(pltpu.get_tpu_info().vmem_capacity_bytes)
    except Exception:  # pragma: no cover - conservative fallback (v7x per-TC)
        cap = 64 * 1024 * 1024
    vmem_limit = int(cap * 0.75)          # stay well under physical capacity
    budget = vmem_limit - (2 << 20)       # headroom for internal scratch
    return budget, vmem_limit


def _pick_tile(dim, preferred, min_tile):
    """Largest tile <= `preferred`, >= `min_tile`, that evenly divides `dim`.

    Falls back to the full dimension (a full-dim block is always legal).
    TODO(synk): large indivisible dims fall back to a single whole-axis block;
    proper tail masking would be needed to tile those shapes.
    """
    if dim <= preferred:
        return dim
    t = preferred
    while t >= min_tile:
        if dim % t == 0:
            return t
        t //= 2
    return dim


def _proj_vmem_bytes(tm, tn, tk, n_out):
    x = 2 * tm * tk * 2                    # double-buffered bf16 x block
    w = n_out * 2 * tk * tn * 2            # double-buffered bf16 weight blocks
    b = n_out * 2 * 8 * tn * 4             # (1, tn) f32 bias, sublane-padded
    o = n_out * 2 * tm * tn * 4            # output blocks (assume f32 worst case)
    acc = n_out * tm * tn * 4              # f32 accumulators
    return x + w + b + o + acc


def _flash_vmem_bytes(tq, tk, D, num_heads):
    qo = 2 * 2 * tq * D * 2                # q + o blocks, double-buffered bf16
    kv = 2 * 2 * tk * D * 2                # k + v blocks, double-buffered bf16
    acc = tq * D * 4                       # (H, tq, dk) f32 accumulator
    ml = 2 * num_heads * tq * 128 * 4      # m/l scratch, lane-padded 1 -> 128
    return qo + kv + acc + ml


def _gemm_tiles(M, N, K, n_out, budget):
    tm_pref, tn_pref, tk_pref = 512, 512, 512
    while True:
        tm = _pick_tile(M, tm_pref, 16)    # bf16 sublane pack -> min 16
        tn = _pick_tile(N, tn_pref, 128)
        tk = _pick_tile(K, tk_pref, 128)
        if _proj_vmem_bytes(tm, tn, tk, n_out) <= budget:
            return tm, tn, tk
        if tn_pref > 256:
            tn_pref //= 2
        elif tm_pref > 256:
            tm_pref //= 2
        elif tk_pref > 256:
            tk_pref //= 2
        elif tm_pref > 128:
            tm_pref //= 2
        else:
            return tm, tn, tk              # alignment floors reached


def _flash_tiles(Sq, Sk, D, num_heads, budget):
    tq_pref, tk_pref = 256, 512            # big KV tile -> fewer rescale steps
    while True:
        tq = _pick_tile(Sq, tq_pref, 16)
        tk = _pick_tile(Sk, tk_pref, 128)
        if _flash_vmem_bytes(tq, tk, D, num_heads) <= budget:
            return tq, tk
        if tk_pref > 256:
            tk_pref //= 2
        elif tq_pref > 128:
            tq_pref //= 2                  # v7x (64 MiB) at large D lands here
        elif tk_pref > 128:
            tk_pref //= 2
        else:
            return tq, tk


# ----------------------------------------------------------------------------
# Kernel 1: fused projection  y_i = x @ W_i + b_i   (i = 0..n_out-1)
#   grid = (M//tm, N//tn, K//tk), K last ("arbitrary"); f32 accumulators.
# ----------------------------------------------------------------------------
def _fused_proj_kernel(x_ref, *refs, n_out):
    k_step = pl.program_id(2)
    w_refs = refs[0:n_out]
    b_refs = refs[n_out:2 * n_out]
    o_refs = refs[2 * n_out:3 * n_out]
    acc_refs = refs[3 * n_out:4 * n_out]

    @pl.when(k_step == 0)
    def _():
        for acc in acc_refs:
            acc[...] = jnp.zeros_like(acc)

    x = x_ref[...]                                   # shared (tm, tk) bf16 tile
    for w, acc in zip(w_refs, acc_refs):
        acc[...] += jnp.dot(x, w[...], preferred_element_type=jnp.float32)

    @pl.when(k_step == pl.num_programs(2) - 1)
    def _():
        for o, b, acc in zip(o_refs, b_refs, acc_refs):
            o[...] = (acc[...] + b[...]).astype(o.dtype)


def fused_projection(x2d, ws, bs, *, out_dtype=jnp.bfloat16):
    """x2d: (M, K), each w: (K, N), each b: (N,) -> tuple of (M, N) arrays."""
    M, K = x2d.shape
    N = ws[0].shape[1]
    n_out = len(ws)
    budget, vmem_limit = _vmem_budget()
    tm, tn, tk = _gemm_tiles(M, N, K, n_out, budget)
    grid = (M // tm, N // tn, K // tk)

    x_spec = pl.BlockSpec((tm, tk), lambda i, j, k: (i, k))
    w_spec = pl.BlockSpec((tk, tn), lambda i, j, k: (k, j))
    b_spec = pl.BlockSpec((1, tn), lambda i, j, k: (0, j))
    o_spec = pl.BlockSpec((tm, tn), lambda i, j, k: (i, j))
    out_sds = jax.ShapeDtypeStruct((M, N), out_dtype)

    kernel = functools.partial(_fused_proj_kernel, n_out=n_out)
    outs = pl.pallas_call(
        kernel,
        out_shape=tuple([out_sds] * n_out),
        grid=grid,
        in_specs=[x_spec] + [w_spec] * n_out + [b_spec] * n_out,
        out_specs=tuple([o_spec] * n_out),
        scratch_shapes=[pltpu.VMEM((tm, tn), jnp.float32)] * n_out,
        compiler_params=pltpu.CompilerParams(
            dimension_semantics=("parallel", "parallel", "arbitrary"),
            vmem_limit_bytes=vmem_limit),
        cost_estimate=pl.CostEstimate(
            flops=n_out * 2 * M * N * K,
            transcendentals=0,
            # x is re-read N/tn times, each W is re-read M/tm times.
            bytes_accessed=2 * (M * K * (N // tn)
                                + n_out * K * N * (M // tm)
                                + n_out * M * N) + n_out * 4 * N),
    )(x2d.astype(jnp.bfloat16),
      *[w.astype(jnp.bfloat16) for w in ws],
      *[b.reshape(1, N).astype(jnp.float32) for b in bs])
    return tuple(outs)


# ----------------------------------------------------------------------------
# Kernel 2: flash-style multi-head attention.
#   q, k, v in merged (B, S, D) layout; heads handled with per-head ref slices,
#   output written per head directly in merged (B, Sq, D) layout.
#   grid = (B, Sq//tq, Sk//tk), KV axis last ("arbitrary"), online softmax.
# ----------------------------------------------------------------------------
def _flash_attention_kernel(q_ref, k_ref, v_ref, o_ref,
                            m_ref, l_ref, acc_ref, *, num_heads, dk):
    kv_step = pl.program_id(2)

    @pl.when(kv_step == 0)
    def _():
        m_ref[...] = jnp.full_like(m_ref, -jnp.inf)
        l_ref[...] = jnp.zeros_like(l_ref)
        acc_ref[...] = jnp.zeros_like(acc_ref)

    # TODO(synk): optional `mask` argument of the PyTorch module is not plumbed
    #             through (the forward here is exercised with mask=None).
    for head in range(num_heads):
        lo, hi = head * dk, (head + 1) * dk
        qh = q_ref[0, :, lo:hi]                      # (tq, dk) bf16 (ref slice)
        kh = k_ref[0, :, lo:hi]                      # (tk, dk) bf16
        vh = v_ref[0, :, lo:hi]                      # (tk, dk) bf16

        # NT form: contract last dims directly on the MXU (no XLU transpose).
        # 1/sqrt(dk) is already folded into W_q, so no per-tile scaling here.
        s = lax.dot_general(qh, kh, (((1,), (1,)), ((), ())),
                            preferred_element_type=jnp.float32)   # (tq, tk)

        m_prev = m_ref[head]                         # (tq, 1) f32
        l_prev = l_ref[head]                         # (tq, 1) f32

        m_new = jnp.maximum(m_prev, jnp.max(s, axis=-1, keepdims=True))
        alpha = jnp.exp(m_prev - m_new)              # (tq, 1)
        p = jnp.exp(s - m_new)                       # (tq, tk) f32

        l_ref[head] = alpha * l_prev + jnp.sum(p, axis=-1, keepdims=True)
        acc_ref[head] = alpha * acc_ref[head] + jnp.dot(
            p.astype(vh.dtype), vh, preferred_element_type=jnp.float32)
        m_ref[head] = m_new

    @pl.when(kv_step == pl.num_programs(2) - 1)
    def _():
        # Normalize the accumulated output (not the probabilities) and write
        # each head directly into its column slice (no concatenate / temp).
        for head in range(num_heads):
            inv_l = pl.reciprocal(l_ref[head], approx=True)       # EUP slot
            o_ref[0, :, head * dk:(head + 1) * dk] = (
                acc_ref[head] * inv_l).astype(o_ref.dtype)


def flash_attention(q, k, v, *, num_heads):
    """q: (B, Sq, D), k/v: (B, Sk, D) -> (B, Sq, D) bf16 (merged-head layout)."""
    B, Sq, D = q.shape
    Sk = k.shape[1]
    dk = D // num_heads
    budget, vmem_limit = _vmem_budget()
    tq, tk = _flash_tiles(Sq, Sk, D, num_heads, budget)
    grid = (B, Sq // tq, Sk // tk)
    num_q_tiles = Sq // tq
    kernel = functools.partial(_flash_attention_kernel,
                               num_heads=num_heads, dk=dk)
    return pl.pallas_call(
        kernel,
        out_shape=jax.ShapeDtypeStruct((B, Sq, D), jnp.bfloat16),
        grid=grid,
        in_specs=[
            pl.BlockSpec((1, tq, D), lambda b, qi, ki: (b, qi, 0)),
            pl.BlockSpec((1, tk, D), lambda b, qi, ki: (b, ki, 0)),
            pl.BlockSpec((1, tk, D), lambda b, qi, ki: (b, ki, 0)),
        ],
        out_specs=pl.BlockSpec((1, tq, D), lambda b, qi, ki: (b, qi, 0)),
        scratch_shapes=[
            pltpu.VMEM((num_heads, tq, 1), jnp.float32),    # running max m
            pltpu.VMEM((num_heads, tq, 1), jnp.float32),    # running denom l
            pltpu.VMEM((num_heads, tq, dk), jnp.float32),   # output accumulator
        ],
        compiler_params=pltpu.CompilerParams(
            dimension_semantics=("parallel", "parallel", "arbitrary"),
            vmem_limit_bytes=vmem_limit),
        cost_estimate=pl.CostEstimate(
            flops=4 * B * Sq * Sk * D,
            transcendentals=B * num_heads * Sq * Sk,
            # K/V blocks are re-fetched once per q tile.
            bytes_accessed=2 * (2 * B * Sq * D
                                + 2 * B * Sk * D * num_q_tiles)),
    )(q.astype(jnp.bfloat16), k.astype(jnp.bfloat16), v.astype(jnp.bfloat16))


# ----------------------------------------------------------------------------
# Module wrapper
# ----------------------------------------------------------------------------
def init_multi_head_attention_params(key, h, d_model):
    """Deterministic init mimicking nn.Linear default (uniform +/- 1/sqrt(fan_in))."""
    assert d_model % h == 0
    bound = 1.0 / math.sqrt(d_model)
    names = ["w_q", "w_k", "w_v", "out_fc"]
    keys = jax.random.split(key, 2 * len(names))
    params = {}
    for i, name in enumerate(names):
        # stored as (in_features, out_features) so kernels compute x @ W + b
        w = jax.random.uniform(keys[2 * i], (d_model, d_model),
                               minval=-bound, maxval=bound, dtype=jnp.float32)
        b = jax.random.uniform(keys[2 * i + 1], (d_model,),
                               minval=-bound, maxval=bound, dtype=jnp.float32)
        params[name] = (w, b)
    return params


def multi_head_attention(params, h, query, key, value):
    """query: (B, Sq, D), key/value: (B, Sk, D) -> (B, Sq, D) in query.dtype."""
    B, Sq, D = query.shape
    Sk = key.shape[1]
    dk = D // h
    scale = 1.0 / math.sqrt(dk)

    wq, bq = params["w_q"]
    wk, bk = params["w_k"]
    wv, bv = params["w_v"]
    wo, bo = params["out_fc"]

    # Fold the 1/sqrt(d_k) attention scale into the Q projection (tiny
    # weight-only XLA op; removes per-tile VPU multiplies from attention).
    wq = wq * scale
    bq = bq * scale

    if query is key and key is value:
        # Self-attention: fused QKV projection reads the activation once.
        q2d, k2d, v2d = fused_projection(
            query.reshape(B * Sq, D), (wq, wk, wv), (bq, bk, bv))
    else:
        (q2d,) = fused_projection(query.reshape(B * Sq, D), (wq,), (bq,))
        if key is value:
            # Cross-attention with shared KV activation: fused 2-output GEMM.
            k2d, v2d = fused_projection(
                key.reshape(B * Sk, D), (wk, wv), (bk, bv))
        else:
            (k2d,) = fused_projection(key.reshape(B * Sk, D), (wk,), (bk,))
            (v2d,) = fused_projection(value.reshape(B * Sk, D), (wv,), (bv,))

    q = q2d.reshape(B, Sq, D)
    k = k2d.reshape(B, Sk, D)
    v = v2d.reshape(B, Sk, D)

    # Head split/merge is done inside the attention kernel -> no XLA transposes,
    # and the output is already in merged (B, Sq, D) layout.
    out = flash_attention(q, k, v, num_heads=h)            # (B, Sq, D) bf16

    (out2d,) = fused_projection(out.reshape(B * Sq, D), (wo,), (bo,),
                                out_dtype=query.dtype)
    return out2d.reshape(B, Sq, D)


# ----------------------------------------------------------------------------
# Pure-JAX f32 reference (matches the PyTorch module)
# ----------------------------------------------------------------------------
def reference(params, h, query, key, value):
    def lin(x, wb):
        w, b = wb
        return x @ w + b
    B, Sq, D = query.shape
    Sk = key.shape[1]
    dk = D // h
    q = lin(query, params["w_q"]).reshape(B, Sq, h, dk).transpose(0, 2, 1, 3)
    k = lin(key, params["w_k"]).reshape(B, Sk, h, dk).transpose(0, 2, 1, 3)
    v = lin(value, params["w_v"]).reshape(B, Sk, h, dk).transpose(0, 2, 1, 3)
    s = jnp.einsum("bhqd,bhkd->bhqk", q, k) / math.sqrt(dk)
    p = jax.nn.softmax(s, axis=-1)
    o = jnp.einsum("bhqk,bhkd->bhqd", p, v)
    o = o.transpose(0, 2, 1, 3).reshape(B, Sq, D)
    return lin(o, params["out_fc"])


if __name__ == "__main__":
    h = 4
    d_model = 32
    B, Sq, Sk = 2, 8, 16

    root = jax.random.PRNGKey(0)
    kp, kx, kq, kk, kv = jax.random.split(root, 5)
    params = init_multi_head_attention_params(kp, h, d_model)

    # Tolerance reflects bf16 matmul operands with f32 accumulation.
    TOL = dict(atol=2e-2, rtol=2e-2)

    # 1) Self-attention (fused 3-output QKV projection path).
    x = jax.random.normal(kx, (B, Sq, d_model), dtype=jnp.float32)
    out_self = multi_head_attention(params, h, x, x, x)
    out_self = jax.block_until_ready(out_self)
    ref_self = reference(params, h, x, x, x)
    assert out_self.shape == (B, Sq, d_model)
    assert jnp.allclose(out_self, ref_self, **TOL), "self-attention mismatch"

    # 2) Cross-attention with distinct K/V (separate projection path, Sq != Sk).
    q_in = jax.random.normal(kq, (B, Sq, d_model), dtype=jnp.float32)
    k_in = jax.random.normal(kk, (B, Sk, d_model), dtype=jnp.float32)
    v_in = jax.random.normal(kv, (B, Sk, d_model), dtype=jnp.float32)
    out_cross = multi_head_attention(params, h, q_in, k_in, v_in)
    out_cross = jax.block_until_ready(out_cross)
    ref_cross = reference(params, h, q_in, k_in, v_in)
    assert out_cross.shape == (B, Sq, d_model)
    assert jnp.allclose(out_cross, ref_cross, **TOL), "cross-attention mismatch"

    # 3) Cross-attention with key is value (fused 2-output KV projection path).
    out_kv = multi_head_attention(params, h, q_in, k_in, k_in)
    out_kv = jax.block_until_ready(out_kv)
    ref_kv = reference(params, h, q_in, k_in, k_in)
    assert out_kv.shape == (B, Sq, d_model)
    assert jnp.allclose(out_kv, ref_kv, **TOL), "shared-KV attention mismatch"

    print("KERNEL_OK")
</pallas_src>

<mosaic_0001>
module attributes {stable_mosaic.version = 11 : i64} {
  func.func @_fused_proj_kernel(%arg0: i32, %arg1: i32, %arg2: i32, %arg3: memref<16x32xbf16, #tpu.memory_space<vmem>>, %arg4: memref<32x32xbf16, #tpu.memory_space<vmem>>, %arg5: memref<32x32xbf16, #tpu.memory_space<vmem>>, %arg6: memref<32x32xbf16, #tpu.memory_space<vmem>>, %arg7: memref<1x32xf32, #tpu.memory_space<vmem>>, %arg8: memref<1x32xf32, #tpu.memory_space<vmem>>, %arg9: memref<1x32xf32, #tpu.memory_space<vmem>>, %arg10: memref<16x32xbf16, #tpu.memory_space<vmem>>, %arg11: memref<16x32xbf16, #tpu.memory_space<vmem>>, %arg12: memref<16x32xbf16, #tpu.memory_space<vmem>>, %arg13: memref<16x32xf32, #tpu.memory_space<vmem>>, %arg14: memref<16x32xf32, #tpu.memory_space<vmem>>, %arg15: memref<16x32xf32, #tpu.memory_space<vmem>>) attributes {dimension_semantics = [#tpu.dimension_semantics<parallel>, #tpu.dimension_semantics<parallel>, #tpu.dimension_semantics<arbitrary>], iteration_bounds = array<i64: 1, 1, 1>, scalar_prefetch = 0 : i64, scratch_operands = 3 : i64, tpu.core_type = #tpu.core_type<tc>, window_params = [{transform_indices = @transform_0, window_bounds = array<i64: 16, 32>}, {transform_indices = @transform_1, window_bounds = array<i64: 32, 32>}, {transform_indices = @transform_2, window_bounds = array<i64: 32, 32>}, {transform_indices = @transform_3, window_bounds = array<i64: 32, 32>}, {transform_indices = @transform_4, window_bounds = array<i64: 1, 32>}, {transform_indices = @transform_5, window_bounds = array<i64: 1, 32>}, {transform_indices = @transform_6, window_bounds = array<i64: 1, 32>}, {transform_indices = @transform_7, window_bounds = array<i64: 16, 32>}, {transform_indices = @transform_8, window_bounds = array<i64: 16, 32>}, {transform_indices = @transform_9, window_bounds = array<i64: 16, 32>}]} {
    %c0_i32 = arith.constant 0 : i32
    %0 = arith.cmpi eq, %arg2, %c0_i32 : i32
    %1 = arith.extui %0 : i1 to i32
    %c0_i32_0 = arith.constant 0 : i32
    %2 = arith.cmpi ne, %1, %c0_i32_0 : i32
    scf.if %2 {
      %cst_24 = arith.constant 0.000000e+00 : f32
      %22 = vector.broadcast %cst_24 : f32 to vector<16x32xf32>
      %c0_25 = arith.constant 0 : index
      %c0_26 = arith.constant 0 : index
      %23 = vector.load %arg13[%c0_25, %c0_26] : memref<16x32xf32, #tpu.memory_space<vmem>>, vector<16x32xf32>
      tpu.vector_store %arg13[%c0_25, %c0_26], %22 {strides = array<i32>} : memref<16x32xf32, #tpu.memory_space<vmem>>, vector<16x32xf32>,
      %cst_27 = arith.constant 0.000000e+00 : f32
      %24 = vector.broadcast %cst_27 : f32 to vector<16x32xf32>
      %c0_28 = arith.constant 0 : index
      %c0_29 = arith.constant 0 : index
      %25 = vector.load %arg14[%c0_28, %c0_29] : memref<16x32xf32, #tpu.memory_space<vmem>>, vector<16x32xf32>
      tpu.vector_store %arg14[%c0_28, %c0_29], %24 {strides = array<i32>} : memref<16x32xf32, #tpu.memory_space<vmem>>, vector<16x32xf32>,
      %cst_30 = arith.constant 0.000000e+00 : f32
      %26 = vector.broadcast %cst_30 : f32 to vector<16x32xf32>
      %c0_31 = arith.constant 0 : index
      %c0_32 = arith.constant 0 : index
      %27 = vector.load %arg15[%c0_31, %c0_32] : memref<16x32xf32, #tpu.memory_space<vmem>>, vector<16x32xf32>
      tpu.vector_store %arg15[%c0_31, %c0_32], %26 {strides = array<i32>} : memref<16x32xf32, #tpu.memory_space<vmem>>, vector<16x32xf32>,
    } else {
    }
    %c0 = arith.constant 0 : index
    %c0_1 = arith.constant 0 : index
    %3 = vector.load %arg3[%c0, %c0_1] : memref<16x32xbf16, #tpu.memory_space<vmem>>, vector<16x32xbf16>
    %c0_2 = arith.constant 0 : index
    %c0_3 = arith.constant 0 : index
    %4 = vector.load %arg13[%c0_2, %c0_3] : memref<16x32xf32, #tpu.memory_space<vmem>>, vector<16x32xf32>
    %c0_4 = arith.constant 0 : index
    %c0_5 = arith.constant 0 : index
    %5 = vector.load %arg4[%c0_4, %c0_5] : memref<32x32xbf16, #tpu.memory_space<vmem>>, vector<32x32xbf16>
    %cst = arith.constant dense<0.000000e+00> : vector<16x32xf32>
    %6 = tpu.matmul %3, %5, %cst {dimension_numbers = #tpu.dot_dimension_numbers<[1], [0], [0], [1], [0, 0, 1, 1], [], []>} : vector<16x32xbf16>, vector<32x32xbf16>, vector<16x32xf32> -> vector<16x32xf32>
    %7 = arith.addf %4, %6 : vector<16x32xf32>
    %c0_6 = arith.constant 0 : index
    %c0_7 = arith.constant 0 : index
    %8 = vector.load %arg13[%c0_6, %c0_7] : memref<16x32xf32, #tpu.memory_space<vmem>>, vector<16x32xf32>
    tpu.vector_store %arg13[%c0_6, %c0_7], %7 {strides = array<i32>} : memref<16x32xf32, #tpu.memory_space<vmem>>, vector<16x32xf32>,
    %c0_8 = arith.constant 0 : index
    %c0_9 = arith.constant 0 : index
    %9 = vector.load %arg14[%c0_8, %c0_9] : memref<16x32xf32, #tpu.memory_space<vmem>>, vector<16x32xf32>
    %c0_10 = arith.constant 0 : index
    %c0_11 = arith.constant 0 : index
    %10 = vector.load %arg5[%c0_10, %c0_11] : memref<32x32xbf16, #tpu.memory_space<vmem>>, vector<32x32xbf16>
    %cst_12 = arith.constant dense<0.000000e+00> : vector<16x32xf32>
    %11 = tpu.matmul %3, %10, %cst_12 {dimension_numbers = #tpu.dot_dimension_numbers<[1], [0], [0], [1], [0, 0, 1, 1], [], []>} : vector<16x32xbf16>, vector<32x32xbf16>, vector<16x32xf32> -> vector<16x32xf32>
    %12 = arith.addf %9, %11 : vector<16x32xf32>
    %c0_13 = arith.constant 0 : index
    %c0_14 = arith.constant 0 : index
    %13 = vector.load %arg14[%c0_13, %c0_14] : memref<16x32xf32, #tpu.memory_space<vmem>>, vector<16x32xf32>
    tpu.vector_store %arg14[%c0_13, %c0_14], %12 {strides = array<i32>} : memref<16x32xf32, #tpu.memory_space<vmem>>, vector<16x32xf32>,
    %c0_15 = arith.constant 0 : index
    %c0_16 = arith.constant 0 : index
    %14 = vector.load %arg15[%c0_15, %c0_16] : memref<16x32xf32, #tpu.memory_space<vmem>>, vector<16x32xf32>
    %c0_17 = arith.constant 0 : index
    %c0_18 = arith.constant 0 : index
    %15 = vector.load %arg6[%c0_17, %c0_18] : memref<32x32xbf16, #tpu.memory_space<vmem>>, vector<32x32xbf16>
    %cst_19 = arith.constant dense<0.000000e+00> : vector<16x32xf32>
    %16 = tpu.matmul %3, %15, %cst_19 {dimension_numbers = #tpu.dot_dimension_numbers<[1], [0], [0], [1], [0, 0, 1, 1], [], []>} : vector<16x32xbf16>, vector<32x32xbf16>, vector<16x32xf32> -> vector<16x32xf32>
    %17 = arith.addf %14, %16 : vector<16x32xf32>
    %c0_20 = arith.constant 0 : index
    %c0_21 = arith.constant 0 : index
    %18 = vector.load %arg15[%c0_20, %c0_21] : memref<16x32xf32, #tpu.memory_space<vmem>>, vector<16x32xf32>
    tpu.vector_store %arg15[%c0_20, %c0_21], %17 {strides = array<i32>} : memref<16x32xf32, #tpu.memory_space<vmem>>, vector<16x32xf32>,
    %c0_i32_22 = arith.constant 0 : i32
    %19 = arith.cmpi eq, %arg2, %c0_i32_22 : i32
    %20 = arith.extui %19 : i1 to i32
    %c0_i32_23 = arith.constant 0 : i32
    %21 = arith.cmpi ne, %20, %c0_i32_23 : i32
    scf.if %21 {
      %c0_24 = arith.constant 0 : index
      %c0_25 = arith.constant 0 : index
      %22 = vector.load %arg13[%c0_24, %c0_25] : memref<16x32xf32, #tpu.memory_space<vmem>>, vector<16x32xf32>
      %c0_26 = arith.constant 0 : index
      %c0_27 = arith.constant 0 : index
      %23 = vector.load %arg7[%c0_26, %c0_27] : memref<1x32xf32, #tpu.memory_space<vmem>>, vector<1x32xf32>
      %24 = vector.broadcast %23 : vector<1x32xf32> to vector<16x32xf32>
      %25 = arith.addf %22, %24 : vector<16x32xf32>
      %26 = arith.truncf %25 : vector<16x32xf32> to vector<16x32xbf16>
      %c0_28 = arith.constant 0 : index
      %c0_29 = arith.constant 0 : index
      %27 = vector.load %arg10[%c0_28, %c0_29] : memref<16x32xbf16, #tpu.memory_space<vmem>>, vector<16x32xbf16>
      tpu.vector_store %arg10[%c0_28, %c0_29], %26 {strides = array<i32>} : memref<16x32xbf16, #tpu.memory_space<vmem>>, vector<16x32xbf16>,
      %c0_30 = arith.constant 0 : index
      %c0_31 = arith.constant 0 : index
      %28 = vector.load %arg14[%c0_30, %c0_31] : memref<16x32xf32, #tpu.memory_space<vmem>>, vector<16x32xf32>
      %c0_32 = arith.constant 0 : index
      %c0_33 = arith.constant 0 : index
      %29 = vector.load %arg8[%c0_32, %c0_33] : memref<1x32xf32, #tpu.memory_space<vmem>>, vector<1x32xf32>
      %30 = vector.broadcast %29 : vector<1x32xf32> to vector<16x32xf32>
      %31 = arith.addf %28, %30 : vector<16x32xf32>
      %32 = arith.truncf %31 : vector<16x32xf32> to vector<16x32xbf16>
      %c0_34 = arith.constant 0 : index
      %c0_35 = arith.constant 0 : index
      %33 = vector.load %arg11[%c0_34, %c0_35] : memref<16x32xbf16, #tpu.memory_space<vmem>>, vector<16x32xbf16>
      tpu.vector_store %arg11[%c0_34, %c0_35], %32 {strides = array<i32>} : memref<16x32xbf16, #tpu.memory_space<vmem>>, vector<16x32xbf16>,
      %c0_36 = arith.constant 0 : index
      %c0_37 = arith.constant 0 : index
      %34 = vector.load %arg15[%c0_36, %c0_37] : memref<16x32xf32, #tpu.memory_space<vmem>>, vector<16x32xf32>
      %c0_38 = arith.constant 0 : index
      %c0_39 = arith.constant 0 : index
      %35 = vector.load %arg9[%c0_38, %c0_39] : memref<1x32xf32, #tpu.memory_space<vmem>>, vector<1x32xf32>
      %36 = vector.broadcast %35 : vector<1x32xf32> to vector<16x32xf32>
      %37 = arith.addf %34, %36 : vector<16x32xf32>
      %38 = arith.truncf %37 : vector<16x32xf32> to vector<16x32xbf16>
      %c0_40 = arith.constant 0 : index
      %c0_41 = arith.constant 0 : index
      %39 = vector.load %arg12[%c0_40, %c0_41] : memref<16x32xbf16, #tpu.memory_space<vmem>>, vector<16x32xbf16>
      tpu.vector_store %arg12[%c0_40, %c0_41], %38 {strides = array<i32>} : memref<16x32xbf16, #tpu.memory_space<vmem>>, vector<16x32xbf16>,
    } else {
    }
    return
  }
  func.func @transform_0(%arg0: i32, %arg1: i32, %arg2: i32) -> (i32, i32) {
    %c0_i32 = arith.constant 0 : i32
    return %arg0, %arg2 : i32, i32
  }
  func.func @transform_1(%arg0: i32, %arg1: i32, %arg2: i32) -> (i32, i32) {
    %c0_i32 = arith.constant 0 : i32
    return %arg2, %arg1 : i32, i32
  }
  func.func @transform_2(%arg0: i32, %arg1: i32, %arg2: i32) -> (i32, i32) {
    %c0_i32 = arith.constant 0 : i32
    return %arg2, %arg1 : i32, i32
  }
  func.func @transform_3(%arg0: i32, %arg1: i32, %arg2: i32) -> (i32, i32) {
    %c0_i32 = arith.constant 0 : i32
    return %arg2, %arg1 : i32, i32
  }
  func.func @transform_4(%arg0: i32, %arg1: i32, %arg2: i32) -> (i32, i32) {
    %c0_i32 = arith.constant 0 : i32
    %c0_i32_0 = arith.constant 0 : i32
    return %c0_i32, %arg1 : i32, i32
  }
  func.func @transform_5(%arg0: i32, %arg1: i32, %arg2: i32) -> (i32, i32) {
    %c0_i32 = arith.constant 0 : i32
    %c0_i32_0 = arith.constant 0 : i32
    return %c0_i32, %arg1 : i32, i32
  }
  func.func @transform_6(%arg0: i32, %arg1: i32, %arg2: i32) -> (i32, i32) {
    %c0_i32 = arith.constant 0 : i32
    %c0_i32_0 = arith.constant 0 : i32
    return %c0_i32, %arg1 : i32, i32
  }
  func.func @transform_7(%arg0: i32, %arg1: i32, %arg2: i32) -> (i32, i32) {
    %c0_i32 = arith.constant 0 : i32
    return %arg0, %arg1 : i32, i32
  }
  func.func @transform_8(%arg0: i32, %arg1: i32, %arg2: i32) -> (i32, i32) {
    %c0_i32 = arith.constant 0 : i32
    return %arg0, %arg1 : i32, i32
  }
  func.func @transform_9(%arg0: i32, %arg1: i32, %arg2: i32) -> (i32, i32) {
    %c0_i32 = arith.constant 0 : i32
    return %arg0, %arg1 : i32, i32
  }
}

</mosaic_0001>

<bundles_post_ra>
// kernel: tpu_custom_call.1
= control target key start
LH: loop header
LB: loop body
LE: loop exit
PB: predicated region body
PF: predicated region fallthrough
CT: control target
= control target key end

     0   :  { %15 = vsyncpa [#allocation6], 0  ;;  %s777_s0 = inlined_call_operand.hbm [shape: bf16[16,32], index: 0, kind: input, shape index: {}]   ;;  %s778_s1 = inlined_call_operand.hbm [shape: bf16[32,32], index: 1, kind: input, shape index: {}]   ;;  %s779_s2 = inlined_call_operand.hbm [shape: bf16[32,32], index: 2, kind: input, shape index: {}]   ;;  %s780_s3 = inlined_call_operand.hbm [shape: bf16[32,32], index: 3, kind: input, shape index: {}]   ;;  %s781_s4 = inlined_call_operand.vmem [shape: f32[1,32], index: 4, kind: input, shape index: {}]   ;;  %s782_s5 = inlined_call_operand.vmem [shape: f32[1,32], index: 5, kind: input, shape index: {}]   ;;  %s783_s6 = inlined_call_operand.vmem [shape: f32[1,32], index: 6, kind: input, shape index: {}]   ;;  %s784_s7 = inlined_call_operand.hbm [shape: bf16[16,32], index: 7, kind: output, shape index: {0}]   ;;  %s785_s8 = inlined_call_operand.hbm [shape: bf16[16,32], index: 8, kind: output, shape index: {1}]   ;;  %s786_s9 = inlined_call_operand.hbm [shape: bf16[16,32], index: 9, kind: output, shape index: {2}]  }
   0x1   :  { %16 = vsyncpa [#allocation9], 0 }
   0x2   :  { %17 = vsyncpa [#allocation12], 0 }
   0x3   :  { %18 = vsyncpa [#allocation7], 0 }
   0x4   :  { %19 = vsyncpa [#allocation15], 0  ;;  %s641_s30 = smov [#allocation8]   ;;  %s642_s11 = smov [#allocation5]  }
   0x5   :  { %s37_s10 = sshll.u32 %s641_s30, 4  ;;  %s25_s12 = sshll.u32 %s642_s11, 4  ;;  %s38_s10 = int_to_ptr.vmem [resolvable:$true] %s37_s10  ;;  %s26_s12 = int_to_ptr.vmem [resolvable:$true] %s25_s12 }
   0x6   :  { %s499_s13 = scalar_lea.vmem %s38_s10, 256  ;;  %p504_p1 = scmp.lt.s32.totalorder %s38_s10, %s38_s10 }
   0x7   :  { %p500_p0 = scmp.ne.s32.totalorder %s38_s10, %s499_s13  ;;  %p505_p2 = scmp.lt.s32.totalorder %s499_s13, %s499_s13 }
   0x9   :  { %p506_p3 = por %p505_p2, %p504_p1 }
   0xb   :  { %p507_p4 = pnand %p506_p3, %p500_p0 }
   0xd   :  { %510 = shalt.err (!%p507_p4)
}
   0xe   :  { %s643_s14 = smov 64   ;;  %s644_s15 = smov 4  }
   0xf   :  { %43 = dma.hbm_to_vmem [thread:$0]  %s778_s1, 256, %s38_s10, [#allocation9], %s643_s14, %s643_s14, %s644_s15  }
  0x10   :  { %s519_s18 = scalar_lea.vmem %s26_s12, 128  ;;  %p524_p6 = scmp.lt.s32.totalorder %s26_s12, %s26_s12 }
  0x11   :  { %p520_p5 = scmp.ne.s32.totalorder %s26_s12, %s519_s18  ;;  %p525_p7 = scmp.lt.s32.totalorder %s519_s18, %s519_s18 }
  0x13   :  { %p526_p8 = por %p525_p7, %p524_p6 }
  0x15   :  { %p527_p9 = pnand %p526_p8, %p520_p5 }
  0x17   :  { %530 = shalt.err (!%p527_p9)
}
  0x18   :  { %31 = dma.hbm_to_vmem [thread:$0]  %s777_s0, 128, %s26_s12, [#allocation6], %s643_s14, %s643_s14, %s644_s15  }
  0x19   :  { %s645_s21 = smov [#allocation10]   ;;  %s646_s23 = smov [#allocation11]  }
  0x1a   :  { %s49_s22 = sshll.u32 %s645_s21, 4  ;;  %s61_s24 = sshll.u32 %s646_s23, 4  ;;  %s50_s22 = int_to_ptr.vmem [resolvable:$true] %s49_s22  ;;  %s62_s24 = int_to_ptr.vmem [resolvable:$true] %s61_s24 }
  0x1b   :  { %s539_s1 = scalar_lea.vmem %s50_s22, 256  ;;  %p544_p11 = scmp.lt.s32.totalorder %s50_s22, %s50_s22 }
  0x1c   :  { %p540_p10 = scmp.ne.s32.totalorder %s50_s22, %s539_s1  ;;  %p545_p12 = scmp.lt.s32.totalorder %s539_s1, %s539_s1 }
  0x1e   :  { %p546_p13 = por %p545_p12, %p544_p11 }
  0x20   :  { %p547_p0 = pnand %p546_p13, %p540_p10 }
  0x22   :  { %550 = shalt.err (!%p547_p0)
}
  0x23   :  { %55 = dma.hbm_to_vmem [thread:$0]  %s779_s2, 256, %s50_s22, [#allocation9], %s643_s14, %s643_s14, %s644_s15  }
  0x24   :  { %s559_s0 = scalar_lea.vmem %s62_s24, 256  ;;  %p564_p2 = scmp.lt.s32.totalorder %s62_s24, %s62_s24 }
  0x25   :  { %p560_p1 = scmp.ne.s32.totalorder %s62_s24, %s559_s0  ;;  %p565_p3 = scmp.lt.s32.totalorder %s559_s0, %s559_s0 }
  0x27   :  { %p566_p4 = por %p565_p3, %p564_p2 }
  0x29   :  { %p567_p5 = pnand %p566_p4, %p560_p1 }
  0x2b   :  { %570 = shalt.err (!%p567_p5)
}
  0x2c   :  { %67 = dma.hbm_to_vmem [thread:$0]  %s780_s3, 256, %s62_s24, [#allocation12], %s643_s14, %s643_s14, %s644_s15  }
  0x2d   :  { %631 = dma.done.wait [#allocation6], 128  }
  0x2e   :  { %632 = vsyncadd [#allocation6], 4294967168 }
  0x2f   :  { %633 = dma.done.wait [#allocation9], 512  }
  0x30   :  { %634 = vsyncadd [#allocation9], 4294966784 }
  0x31   :  { %635 = dma.done.wait [#allocation12], 256  }
  0x32   :  { %636 = vsyncadd [#allocation12], 4294967040  ;;  %vm91_vm0 = vcmask 261120   ;;  %v647_v0 = vmov 0.0   ;;  %vm648_vm1 = vmmov 0   ;;  %v484_v1 = vld [vmem:[#allocation8 + $0x8] sm:$0xff]  }
  0x33   :  { %449 = vmatprep.subr.bf16.mxu0 %v647_v0  ;;  %457 = vmatprep.subr.bf16.mxu1 %v647_v0  ;;  %92 = vst.msk [vmem:[#allocation2] sm:$0xff] %vm91_vm0, %v647_v0  ;;  %93 = vst.msk [vmem:[#allocation2 + $0x8] sm:$0xff] %vm91_vm0, %v647_v0  ;;  %v485_v2 = vld [vmem:[#allocation10 + $0x8] sm:$0xff]   ;;  %v486_v3 = vld [vmem:[#allocation8] sm:$0xff]   ;;  %vm320_vm2 = vcmask 257024  }
  0x34   :  { %94 = vst.msk [vmem:[#allocation3] sm:$0xff] %vm91_vm0, %v647_v0  ;;  %95 = vst.msk [vmem:[#allocation3 + $0x8] sm:$0xff] %vm91_vm0, %v647_v0  ;;  %453 = vmatprep.mubr.msk.bf16.mxu0 %vm648_vm1, %v647_v0  ;;  %461 = vmatprep.mubr.msk.bf16.mxu1 %vm648_vm1, %v647_v0  ;;  %v487_v4 = vld [vmem:[#allocation10] sm:$0xff]   ;;  %v488_v5 = vld [vmem:[#allocation5] sm:$0xff]  }
  0x35   :  { %96 = vst.msk [vmem:[#allocation4] sm:$0xff] %vm91_vm0, %v647_v0  ;;  %97 = vst.msk [vmem:[#allocation4 + $0x8] sm:$0xff] %vm91_vm0, %v647_v0  ;;  %450 = vmatpush3.bf16.msra.mxu0 %v484_v1  ;;  %458 = vmatpush3.bf16.msra.mxu1 %v485_v2  ;;  %v489_v6 = vld [vmem:[#allocation11 + $0x8] sm:$0xff]   ;;  %v490_v7 = vld [vmem:[#allocation11] sm:$0xff]  }
  0x36   :  { %451 = vmatprep.subr.bf16.mxu0 %v647_v0  ;;  %459 = vmatprep.subr.bf16.mxu1 %v647_v0  ;;  %v425_v26 = vld [vmem:[%s781_s4] ss:$0 sm:$0xff]  ;;  %s649_s4 = smov [#allocation13]  }
  0x37   :  { %v428_v28 = vld [vmem:[%s782_s5] ss:$0 sm:$0xff]  ;;  %s370_s10 = sshll.u32 %s649_s4, 4  ;;  %s650_s5 = smov [#allocation14]   ;;  %s371_s10 = int_to_ptr.vmem [resolvable:$true] %s370_s10 }
  0x38   :  { %s382_s11 = sshll.u32 %s650_s5, 4  ;;  %v431_v44 = vld [vmem:[%s783_s6] ss:$0 sm:$0xff]  ;;  %s571_s16 = scalar_lea.vmem %s371_s10, 128  ;;  %s383_s11 = int_to_ptr.vmem [resolvable:$true] %s382_s11 }
  0x39   :  { %452 = vmatpush3.bf16.msra.mxu0 %v486_v3  ;;  %460 = vmatpush3.bf16.msra.mxu1 %v487_v4  ;;  %p572_p6 = scmp.ne.s32.totalorder %s371_s10, %s571_s16  ;;  %p576_p7 = scmp.lt.s32.totalorder %s371_s10, %s371_s10 }
  0x3a   :  { %465 = vmatprep.subr.bf16.mxu0 %v647_v0  ;;  %v100_v8 = vld [vmem:[#allocation2] sm:$0xff]  ;;  %v101_v15 = vld [vmem:[#allocation2 + $0x8] sm:$0xff]  ;;  %p577_p8 = scmp.lt.s32.totalorder %s571_s16, %s571_s16 }
  0x3b   :  { %v172_v9 = vld [vmem:[#allocation3] sm:$0xff]  ;;  %v173_v17 = vld [vmem:[#allocation3 + $0x8] sm:$0xff] }
  0x3c   :  { %454 = vmatmul.mubr.msk.bf16.vlgmr.msra.gmra.mxu0 %vm91_vm0, %v488_v5  ;;  %462 = vmatmul.mubr.msk.bf16.vlgmr.msra.gmra.mxu1 %vm91_vm0, %v488_v5  ;;  %v235_v23 = vld [vmem:[#allocation4] sm:$0xff]  ;;  %v236_v30 = vld [vmem:[#allocation4 + $0x8] sm:$0xff]  ;;  %p578_p9 = por %p577_p8, %p576_p7 }
  0x3d   :  { %466 = vmatpush3.bf16.msra.mxu0 %v489_v6  ;;  %469 = vmatprep.mubr.msk.bf16.mxu0 %vm648_vm1, %v647_v0 }
  0x3e   :  { %467 = vmatprep.subr.bf16.mxu0 %v647_v0  ;;  %p579_p10 = pnand %p578_p9, %p572_p6 }
  0x41   :  { %468 = vmatpush3.bf16.msra.mxu0 %v490_v7 }
  0x44   :  { %470 = vmatmul.mubr.msk.bf16.vlgmr.msra.gmra.mxu0 %vm91_vm0, %v488_v5 }
  0xfc   :  { %v161_v10 = vpop.f32.mrf.mxu0  ;;  %v224_v12 = vpop.f32.mrf.mxu1 }
  0xfd   :  { %v168_v11 = vadd.f32 %v161_v10, %v100_v8  ;;  %v231_v14 = vadd.f32 %v224_v12, %v172_v9 }
  0xfe   :  { %v455_v13 = vpop.f32.mrf.mxu0  ;;  %v463_v16 = vpop.f32.mrf.mxu1 }
  0xff   :  { %170 = vst.msk [vmem:[#allocation2] sm:$0xff] %vm91_vm0, %v168_v11  ;;  %233 = vst.msk [vmem:[#allocation3] sm:$0xff] %vm91_vm0, %v231_v14 }
 0x100   :  { %v164_v18 = vpop.f32.mrf.mxu0  ;;  %v227_v20 = vpop.f32.mrf.mxu1 }
 0x101   :  { %v169_v19 = vadd.f32 %v164_v18, %v101_v15  ;;  %v232_v22 = vadd.f32 %v227_v20, %v173_v17 }
 0x102   :  { %v456_v21 = vpop.f32.mrf.mxu0  ;;  %v464_v24 = vpop.f32.mrf.mxu1 }
 0x103   :  { %171 = vst.msk [vmem:[#allocation2 + $0x8] sm:$0xff] %vm91_vm0, %v169_v19  ;;  %234 = vst.msk [vmem:[#allocation3 + $0x8] sm:$0xff] %vm91_vm0, %v232_v22 }
 0x104   :  { %v287_v25 = vpop.f32.mrf.mxu0 }
 0x105   :  { %v294_v27 = vadd.f32 %v287_v25, %v235_v23 }
 0x106   :  { %v471_v29 = vpop.f32.mrf.mxu0  ;;  %v301_v31 = vld [vmem:[#allocation2] sm:$0xff]  ;;  %v323_v32 = vld [vmem:[#allocation3] sm:$0xff] }
 0x107   :  { %296 = vst.msk [vmem:[#allocation4] sm:$0xff] %vm91_vm0, %v294_v27  ;;  %v310_v33 = vadd.f32 %v425_v26, %v301_v31  ;;  %v332_v35 = vadd.f32 %v428_v28, %v323_v32 }
 0x108   :  { %v290_v34 = vpop.f32.mrf.mxu0 }
 0x109   :  { %v295_v36 = vadd.f32 %v290_v34, %v236_v30  ;;  %v434_v37 = vpack.c.bf16 %v310_v33, %v310_v33  ;;  %v436_v39 = vpack.c.bf16 %v332_v35, %v332_v35 }
 0x10a   :  { %v472_v38 = vpop.f32.mrf.mxu0  ;;  %v302_v40 = vld [vmem:[#allocation2 + $0x8] sm:$0xff]  ;;  %v324_v41 = vld [vmem:[#allocation3 + $0x8] sm:$0xff] }
 0x10b   :  { %297 = vst.msk [vmem:[#allocation4 + $0x8] sm:$0xff] %vm91_vm0, %v295_v36  ;;  %v311_v42 = vadd.f32 %v425_v26, %v302_v40  ;;  %v333_v43 = vadd.f32 %v428_v28, %v324_v41 }
 0x10c   :  { %321 = vst.msk [vmem:[#allocation13] sm:$0xf] %vm320_vm2, %v434_v37  ;;  %342 = vst.msk [vmem:[#allocation14] sm:$0xf] %vm320_vm2, %v436_v39 }
 0x10d   :  { %v435_v45 = vpack.c.bf16 %v311_v42, %v311_v42  ;;  %v437_v46 = vpack.c.bf16 %v333_v43, %v333_v43 }
 0x10e   :  { %v344_v47 = vld [vmem:[#allocation4] sm:$0xff] }
 0x10f   :  { %322 = vst.msk [vmem:[#allocation13 + $0x4] sm:$0xf] %vm320_vm2, %v435_v45  ;;  %v353_v48 = vadd.f32 %v431_v44, %v344_v47  ;;  %343 = vst.msk [vmem:[#allocation14 + $0x4] sm:$0xf] %vm320_vm2, %v437_v46 }
 0x110   :  { %582 = shalt.err (!%p579_p10)
}
 0x111   :  { %376 = dma.vmem_to_hbm [thread:$0]  %s371_s10, 128, %s784_s7, [#allocation7], %s643_s14, %s643_s14, %s644_s15  }
 0x112   :  { %s591_s18 = scalar_lea.vmem %s383_s11, 128  ;;  %p596_p12 = scmp.lt.s32.totalorder %s383_s11, %s383_s11 }
 0x113   :  { %p592_p11 = scmp.ne.s32.totalorder %s383_s11, %s591_s18  ;;  %p597_p13 = scmp.lt.s32.totalorder %s591_s18, %s591_s18 }
 0x115   :  { %p598_p0 = por %p597_p13, %p596_p12 }
 0x117   :  { %p599_p1 = pnand %p598_p0, %p592_p11 }
 0x119   :  { %602 = shalt.err (!%p599_p1)
}
 0x11a   :  { %388 = dma.vmem_to_hbm [thread:$0]  %s383_s11, 128, %s785_s8, [#allocation15], %s643_s14, %s643_s14, %s644_s15   ;;  %v438_v49 = vpack.c.bf16 %v353_v48, %v353_v48  ;;  %v345_v50 = vld [vmem:[#allocation4 + $0x8] sm:$0xff] }
 0x11b   :  { %s651_s21 = smov [#allocation16]   ;;  %v354_v51 = vadd.f32 %v431_v44, %v345_v50 }
 0x11c   :  { %s394_s22 = sshll.u32 %s651_s21, 4  ;;  %363 = vst.msk [vmem:[#allocation16] sm:$0xf] %vm320_vm2, %v438_v49  ;;  %s395_s22 = int_to_ptr.vmem [resolvable:$true] %s394_s22 }
 0x11d   :  { %v439_v52 = vpack.c.bf16 %v354_v51, %v354_v51  ;;  %s611_s7 = scalar_lea.vmem %s395_s22, 128  ;;  %p616_p3 = scmp.lt.s32.totalorder %s395_s22, %s395_s22 }
 0x11e   :  { %p612_p2 = scmp.ne.s32.totalorder %s395_s22, %s611_s7  ;;  %p617_p4 = scmp.lt.s32.totalorder %s611_s7, %s611_s7 }
 0x11f   :  { %364 = vst.msk [vmem:[#allocation16 + $0x4] sm:$0xf] %vm320_vm2, %v439_v52 }
 0x120   :  { %p618_p5 = por %p617_p4, %p616_p3 }
 0x122   :  { %p619_p6 = pnand %p618_p5, %p612_p2 }
 0x124   :  { %622 = shalt.err (!%p619_p6)
}
 0x125   :  { %400 = dma.vmem_to_hbm [thread:$0]  %s395_s22, 128, %s786_s9, [#allocation15], %s643_s14, %s643_s14, %s644_s15  }
 0x126   :  { %637 = dma.done.wait [#allocation7], 128  }
 0x127   :  { %638 = vsyncadd [#allocation7], 4294967168 }
 0x128   :  { %639 = dma.done.wait [#allocation15], 256  }
 0x129   :  { %640 = vsyncadd [#allocation15], 4294967040 }
 0x12a   :  { %410 = vsyncpa [#allocation6], 1 }
 0x12b   :  { %411 = vsyncpa [#allocation9], 1 }
 0x12c   :  { %412 = vsyncpa [#allocation12], 1 }
 0x12d   :  { %413 = vsyncpa [#allocation7], 1 }
 0x12e   :  { %414 = vsyncpa [#allocation15], 1 }

</bundles_post_ra>
